<compile_context>
chip_gen: v7x
topology: tpu7x:2x2x1
jax: 0.10.0
libtpu: 0.0.40
codegen_flags: <defaults>
</compile_context>

<pallas_src>
import jax
import jax.numpy as jnp
from jax.experimental import pallas as pl
from jax.experimental.pallas import tpu as pltpu


def _round_up(v, m):
    return (v + m - 1) // m * m


def _choose_row_block(rows, row_bytes):
    """Rows per tile: target ~2 MiB tiles, keep >=~8 grid steps when possible,
    never shrink below ~512 KiB just for depth; multiple of 8 (sublane) or full extent."""
    TARGET_TILE = 2 << 20     # ~2 MiB per tile
    MIN_TILE = 512 << 10      # don't go below ~512 KiB just to deepen the grid
    MIN_STEPS = 8             # pipeline depth / feed both v7x TensorCores
    rb_target = max(1, TARGET_TILE // row_bytes)
    rb_depth = max(1, rows // MIN_STEPS)
    rb_floor = max(1, MIN_TILE // row_bytes)
    rb = min(rb_target, max(rb_depth, rb_floor))
    rb = max(8, (rb // 8) * 8)            # sublane-align
    return min(rb, rows)                  # if rows < rb, block == full dim (also legal)


def _make_msfe_kernel(inv_hw):
    def kernel(x_ref, o_ref):
        x = x_ref[...]                                            # (rb, HWp) in input dtype
        # f32-accumulated spatial sum (lane zero-padding contributes nothing);
        # divide by the TRUE H*W, not the padded width.
        gap = jnp.sum(x, axis=-1, keepdims=True, dtype=jnp.float32) * inv_hw
        scale = 1.0 + jax.nn.sigmoid(jnp.maximum(gap, 0.0))       # 1 + sigmoid(relu(gap))
        o_ref[...] = x * scale.astype(x.dtype)                    # rescale in input dtype
    return kernel


def msfe_forward(x_nchw):
    """MSFE.forward equivalent. NCHW in, NCHW out."""
    N, C, H, W = x_nchw.shape
    HW = H * W
    rows = N * C
    dtype = x_nchw.dtype
    itemsize = jnp.dtype(dtype).itemsize

    HWp = _round_up(HW, 128)              # lane-dense, unmasked vld/vst
    row_bytes = HWp * itemsize
    rb = _choose_row_block(rows, row_bytes)
    rows_p = _round_up(rows, rb)

    x2 = x_nchw.reshape(rows, HW)         # pure reshape, no transpose
    needs_pad = (rows_p != rows) or (HWp != HW)
    if needs_pad:
        x2 = jnp.pad(x2, ((0, rows_p - rows), (0, HWp - HW)))

    out = pl.pallas_call(
        _make_msfe_kernel(1.0 / float(HW)),
        out_shape=jax.ShapeDtypeStruct((rows_p, HWp), dtype),
        grid=(rows_p // rb,),
        in_specs=[pl.BlockSpec((rb, HWp), lambda i: (i, 0))],
        out_specs=pl.BlockSpec((rb, HWp), lambda i: (i, 0)),
        compiler_params=pltpu.CompilerParams(
            dimension_semantics=("parallel",),        # independent rows (v7x 2-TC sharding)
            vmem_limit_bytes=32 * 1024 * 1024,        # headroom above v5e's 16 MiB default
        ),
    )(x2)

    if needs_pad:
        out = out[:rows, :HW]
    return out.reshape(N, C, H, W)


# ----------------------------------------------------------------------------
# Pure-JAX reference (mirrors the PyTorch forward exactly) for correctness check.
# ----------------------------------------------------------------------------
def _msfe_reference(x_nchw):
    xf = x_nchw.astype(jnp.float32)
    gap = jnp.mean(xf, axis=(2, 3), keepdims=True)               # avg_pool2d over (H, W)
    gap = jax.nn.sigmoid(jnp.maximum(gap, 0.0))                  # sigmoid(relu(.))
    return (xf + xf * gap).astype(x_nchw.dtype)                  # x += x * gap


if __name__ == "__main__":
    key = jax.random.PRNGKey(0)

    # Test 1: lane-aligned f32 case (H*W multiple of 128).
    x1 = jax.random.normal(key, (2, 32, 16, 16), jnp.float32)
    o1 = jax.block_until_ready(msfe_forward(x1))
    r1 = _msfe_reference(x1)
    assert o1.shape == x1.shape
    assert bool(jnp.isfinite(o1).all())
    assert bool(jnp.allclose(o1, r1, atol=1e-5, rtol=1e-5)), "f32 aligned mismatch"

    # Test 2: non-128-aligned feature map (13x13) -> exercises zero-pad + true-HW divide.
    k2 = jax.random.PRNGKey(0)
    x2 = jax.random.normal(k2, (2, 16, 13, 13), jnp.float32)
    o2 = jax.block_until_ready(msfe_forward(x2))
    r2 = _msfe_reference(x2)
    assert bool(jnp.allclose(o2, r2, atol=1e-5, rtol=1e-5)), "f32 unaligned mismatch"

    # Test 3: bf16 path (f32-accumulated reduction, bf16 rescale).
    x3 = jax.random.normal(jax.random.PRNGKey(0), (2, 32, 16, 16), jnp.bfloat16)
    o3 = jax.block_until_ready(msfe_forward(x3))
    r3 = _msfe_reference(x3)
    assert bool(jnp.allclose(o3.astype(jnp.float32), r3.astype(jnp.float32),
                             atol=2e-2, rtol=2e-2)), "bf16 mismatch"

    print("KERNEL_OK")
</pallas_src>

<mosaic_0001>
module attributes {stable_mosaic.version = 11 : i64} {
  func.func @kernel(%arg0: i32, %arg1: memref<64x256xf32, #tpu.memory_space<vmem>>, %arg2: memref<64x256xf32, #tpu.memory_space<vmem>>) attributes {dimension_semantics = [#tpu.dimension_semantics<parallel>], iteration_bounds = array<i64: 1>, scalar_prefetch = 0 : i64, scratch_operands = 0 : i64, tpu.core_type = #tpu.core_type<tc>, window_params = [{transform_indices = @transform_0, window_bounds = array<i64: 64, 256>}, {transform_indices = @transform_1, window_bounds = array<i64: 64, 256>}]} {
    %c0 = arith.constant 0 : index
    %c0_0 = arith.constant 0 : index
    %0 = vector.load %arg1[%c0, %c0_0] : memref<64x256xf32, #tpu.memory_space<vmem>>, vector<64x256xf32>
    %cst = arith.constant dense<0.000000e+00> : vector<64xf32>
    %1 = vector.multi_reduction <add>, %0, %cst [1] : vector<64x256xf32> to vector<64xf32>
    %2 = vector.shape_cast %1 : vector<64xf32> to vector<64x1xf32>
    %cst_1 = arith.constant 3.906250e-03 : f32
    %3 = vector.broadcast %cst_1 : f32 to vector<64x1xf32>
    %4 = arith.mulf %2, %3 : vector<64x1xf32>
    %cst_2 = arith.constant 0.000000e+00 : f32
    %5 = vector.broadcast %cst_2 : f32 to vector<64x1xf32>
    %6 = arith.maximumf %4, %5 : vector<64x1xf32>
    %7 = arith.negf %6 : vector<64x1xf32>
    %8 = math.exp %7 : vector<64x1xf32>
    %cst_3 = arith.constant 1.000000e+00 : f32
    %9 = vector.broadcast %cst_3 : f32 to vector<64x1xf32>
    %10 = arith.addf %9, %8 : vector<64x1xf32>
    %11 = arith.divf %9, %10 : vector<64x1xf32>
    %cst_4 = arith.constant 1.000000e+00 : f32
    %12 = vector.broadcast %cst_4 : f32 to vector<64x1xf32>
    %13 = arith.addf %12, %11 : vector<64x1xf32>
    %14 = vector.broadcast %13 : vector<64x1xf32> to vector<64x256xf32>
    %15 = arith.mulf %0, %14 : vector<64x256xf32>
    %c0_5 = arith.constant 0 : index
    %c0_6 = arith.constant 0 : index
    %16 = vector.load %arg2[%c0_5, %c0_6] : memref<64x256xf32, #tpu.memory_space<vmem>>, vector<64x256xf32>
    tpu.vector_store %arg2[%c0_5, %c0_6], %15 {strides = array<i32>} : memref<64x256xf32, #tpu.memory_space<vmem>>, vector<64x256xf32>,
    return
  }
  func.func @transform_0(%arg0: i32) -> (i32, i32) {
    %c0_i32 = arith.constant 0 : i32
    %c0_i32_0 = arith.constant 0 : i32
    return %arg0, %c0_i32 : i32, i32
  }
  func.func @transform_1(%arg0: i32) -> (i32, i32) {
    %c0_i32 = arith.constant 0 : i32
    %c0_i32_0 = arith.constant 0 : i32
    return %arg0, %c0_i32 : i32, i32
  }
}

</mosaic_0001>

<bundles_post_ra>
// kernel: tpu_custom_call.1
= control target key start
LH: loop header
LB: loop body
LE: loop exit
PB: predicated region body
PF: predicated region fallthrough
CT: control target
= control target key end

     0   :  { %6 = vsyncpa [#allocation3], 0  ;;  %s384_s0 = inlined_call_operand.hbm [shape: f32[64,256], index: 0, kind: input, shape index: {}]   ;;  %s385_s1 = inlined_call_operand.hbm [shape: f32[64,256], index: 1, kind: output, shape index: {}]  }
   0x1   :  { %7 = vsyncpa [#allocation4], 0  ;;  %s276_s6 = smov [#allocation2]   ;;  %s228_s10 = scalar_lea.hbm %s384_s0, 2048 }
   0x2   :  { %s13_s7 = sshll.u32 %s276_s6, 4  ;;  %p229_p0 = scmp.ne.s32.totalorder %s384_s0, %s228_s10  ;;  %s14_s7 = int_to_ptr.vmem [resolvable:$true] %s13_s7 }
   0x3   :  { %p232_p1 = scmp.lt.u32.totalorder %s228_s10, %s384_s0 }
   0x5   :  { %p234_p2 = pnand %p232_p1, %p229_p0 }
   0x7   :  { %237 = shalt.err (!%p234_p2)
}
   0x8   :  { %s238_s15 = scalar_lea.vmem %s14_s7, 2048  ;;  %p243_p4 = scmp.lt.s32.totalorder %s14_s7, %s14_s7 }
   0x9   :  { %p239_p3 = scmp.ne.s32.totalorder %s14_s7, %s238_s15  ;;  %p244_p5 = scmp.lt.s32.totalorder %s238_s15, %s238_s15 }
   0xb   :  { %p245_p6 = por %p244_p5, %p243_p4 }
   0xd   :  { %p246_p7 = pnand %p245_p6, %p239_p3 }
   0xf   :  { %249 = shalt.err (!%p246_p7)
}
  0x10   :  { %s277_s16 = smov 256   ;;  %s278_s17 = smov 16  }
  0x11   :  { %19 = dma.hbm_to_vmem [thread:$0]  %s384_s0, 2048, %s14_s7, [#allocation3], %s277_s16, %s277_s16, %s278_s17  }
  0x12   :  { %272 = dma.done.wait [#allocation3], 2048  }
  0x13   :  { %273 = vsyncadd [#allocation3], 4294965248  ;;  %v305_v0 = vld [vmem:[#allocation2 + $0x20] sm:$0xff]  ;;  %v307_v1 = vld [vmem:[#allocation2 + $0x28] sm:$0xff]  ;;  %s279_s0 = smov [#allocation5]  }
  0x14   :  { %v309_v2 = vld [vmem:[#allocation2] sm:$0xff]  ;;  %v45_v3 = vadd.f32 %v307_v1, %v305_v0  ;;  %v313_v4 = vld [vmem:[#allocation2 + $0x8] sm:$0xff]  ;;  %v315_v5 = vld [vmem:[#allocation2 + $0x30] sm:$0xff]  ;;  %s172_s20 = sshll.u32 %s279_s0, 4  ;;  %s173_s20 = int_to_ptr.vmem [resolvable:$true] %s172_s20 }
  0x15   :  { %v317_v6 = vld [vmem:[#allocation2 + $0x38] sm:$0xff]  ;;  %v39_v7 = vadd.f32 %v313_v4, %v309_v2  ;;  %v321_v8 = vld [vmem:[#allocation2 + $0x10] sm:$0xff]  ;;  %v333_v14 = vld [vmem:[#allocation2 + $0x40] sm:$0xff]  ;;  %s250_s21 = scalar_lea.vmem %s173_s20, 2048  ;;  %p255_p9 = scmp.lt.s32.totalorder %s173_s20, %s173_s20 }
  0x16   :  { %v323_v9 = vld [vmem:[#allocation2 + $0x18] sm:$0xff]  ;;  %46 = vadd.xlane.f32.xlu1 %v45_v3  ;;  %v48_v10 = vadd.f32 %v317_v6, %v315_v5  ;;  %v329_v12 = vld [vmem:[#allocation2 + $0x50] sm:$0xff]  ;;  %v335_v15 = vld [vmem:[#allocation2 + $0x48] sm:$0xff]  ;;  %p251_p8 = scmp.ne.s32.totalorder %s173_s20, %s250_s21  ;;  %p256_p10 = scmp.lt.s32.totalorder %s250_s21, %s250_s21 }
  0x17   :  { %40 = vadd.xlane.f32.xlu0 %v39_v7  ;;  %v42_v11 = vadd.f32 %v323_v9, %v321_v8  ;;  %v331_v13 = vld [vmem:[#allocation2 + $0x58] sm:$0xff]  ;;  %v51_v17 = vadd.f32 %v335_v15, %v333_v14  ;;  %v341_v18 = vld [vmem:[#allocation2 + $0x70] sm:$0xff]  ;;  %v345_v20 = vld [vmem:[#allocation2 + $0x60] sm:$0xff] }
  0x18   :  { %v54_v16 = vadd.f32 %v331_v13, %v329_v12  ;;  %v343_v19 = vld [vmem:[#allocation2 + $0x78] sm:$0xff]  ;;  %v347_v21 = vld [vmem:[#allocation2 + $0x68] sm:$0xff]  ;;  %p257_p11 = por %p256_p10, %p255_p9 }
  0x19   :  { %v60_v22 = vadd.f32 %v343_v19, %v341_v18  ;;  %v57_v23 = vadd.f32 %v347_v21, %v345_v20 }
  0x1a   :  { %49 = vadd.xlane.f32.xlu1 %v48_v10  ;;  %p258_p12 = pnand %p257_p11, %p251_p8 }
  0x1b   :  { %43 = vadd.xlane.f32.xlu0 %v42_v11 }
  0x1e   :  { %55 = vadd.xlane.f32.xlu1 %v54_v16 }
  0x1f   :  { %52 = vadd.xlane.f32.xlu0 %v51_v17 }
  0x22   :  { %61 = vadd.xlane.f32.xlu1 %v60_v22 }
  0x23   :  { %58 = vadd.xlane.f32.xlu0 %v57_v23 }
  0xa3   :  { %v47_v24 = vpop.xlane.xlu1 %46 }
  0xa4   :  { %v65_v25 = vmul.f32 0.00390625, %v47_v24  ;;  %v41_v26 = vpop.xlane.xlu0 %40 }
  0xa5   :  { %v63_v27 = vmul.f32 0.00390625, %v41_v26 }
  0xa6   :  { %v73_v28 = vmax.f32 %v65_v25, 0.0 }
  0xa7   :  { %v71_v29 = vmax.f32 %v63_v27, 0.0  ;;  %v50_v30 = vpop.xlane.xlu1 %49 }
  0xa8   :  { %v186_v31 = vmul.f32 -1.442695, %v73_v28  ;;  %v66_v32 = vmul.f32 0.00390625, %v50_v30  ;;  %v44_v33 = vpop.xlane.xlu0 %43 }
  0xa9   :  { %v184_v34 = vmul.f32 -1.442695, %v71_v29  ;;  %v64_v35 = vmul.f32 0.00390625, %v44_v33 }
  0xaa   :  { %196 = vpow2.f32 %v186_v31  ;;  %v74_v36 = vmax.f32 %v66_v32, 0.0 }
  0xab   :  { %198 = vpow2.f32 %v184_v34  ;;  %v72_v37 = vmax.f32 %v64_v35, 0.0  ;;  %v56_v38 = vpop.xlane.xlu1 %55 }
  0xac   :  { %v187_v39 = vmul.f32 -1.442695, %v74_v36  ;;  %v68_v40 = vmul.f32 0.00390625, %v56_v38  ;;  %v53_v41 = vpop.xlane.xlu0 %52 }
  0xad   :  { %v185_v42 = vmul.f32 -1.442695, %v72_v37  ;;  %v67_v43 = vmul.f32 0.00390625, %v53_v41 }
  0xae   :  { %200 = vpow2.f32 %v187_v39  ;;  %v76_v44 = vmax.f32 %v68_v40, 0.0 }
  0xaf   :  { %202 = vpow2.f32 %v185_v42  ;;  %v75_v45 = vmax.f32 %v67_v43, 0.0  ;;  %v62_v46 = vpop.xlane.xlu1 %61 }
  0xb0   :  { %v189_v47 = vmul.f32 -1.442695, %v76_v44  ;;  %v70_v48 = vmul.f32 0.00390625, %v62_v46  ;;  %v59_v49 = vpop.xlane.xlu0 %58 }
  0xb1   :  { %v188_v50 = vmul.f32 -1.442695, %v75_v45  ;;  %v69_v51 = vmul.f32 0.00390625, %v59_v49 }
  0xb2   :  { %204 = vpow2.f32 %v189_v47  ;;  %v78_v52 = vmax.f32 %v70_v48, 0.0 }
  0xb3   :  { %206 = vpow2.f32 %v188_v50  ;;  %v77_v53 = vmax.f32 %v69_v51, 0.0 }
  0xb4   :  { %v197_v54 = vpop.eup %196  ;;  %v191_v55 = vmul.f32 -1.442695, %v78_v52 }
  0xb5   :  { %v199_v56 = vpop.eup %198  ;;  %v105_v57 = vadd.f32 1.0, %v197_v54  ;;  %v190_v58 = vmul.f32 -1.442695, %v77_v53 }
  0xb6   :  { %v103_v59 = vadd.f32 1.0, %v199_v56  ;;  %208 = vpow2.f32 %v191_v55 }
  0xb7   :  { %210 = vrcp.f32 %v105_v57 }
  0xb8   :  { %v201_v60 = vpop.eup %200  ;;  %212 = vrcp.f32 %v103_v59 }
  0xb9   :  { %v203_v61 = vpop.eup %202  ;;  %v106_v62 = vadd.f32 1.0, %v201_v60  ;;  %214 = vpow2.f32 %v190_v58 }
  0xba   :  { %v104_v63 = vadd.f32 1.0, %v203_v61 }
  0xbb   :  { %216 = vrcp.f32 %v106_v62 }
  0xbc   :  { %v205_v3 = vpop.eup %204  ;;  %218 = vrcp.f32 %v104_v63 }
  0xbd   :  { %v207_v7 = vpop.eup %206  ;;  %v108_v10 = vadd.f32 1.0, %v205_v3 }
  0xbe   :  { %v107_v11 = vadd.f32 1.0, %v207_v7 }
  0xbf   :  { %220 = vrcp.f32 %v108_v10 }
  0xc0   :  { %v209_v16 = vpop.eup %208  ;;  %222 = vrcp.f32 %v107_v11 }
  0xc1   :  { %v211_v17 = vpop.eup %210  ;;  %v110_v22 = vadd.f32 1.0, %v209_v16 }
  0xc2   :  { %v213_v23 = vpop.eup %212  ;;  %v129_v24 = vadd.f32 1.0, %v211_v17 }
  0xc3   :  { %v215_v25 = vpop.eup %214  ;;  %v127_v26 = vadd.f32 1.0, %v213_v23  ;;  %224 = vrcp.f32 %v110_v22 }
  0xc4   :  { %v139_v27 = vmul.f32 %v129_v24, %v305_v0  ;;  %v140_v28 = vmul.f32 %v129_v24, %v307_v1  ;;  %v109_v29 = vadd.f32 1.0, %v215_v25 }
  0xc5   :  { %v217_v30 = vpop.eup %216  ;;  %v135_v31 = vmul.f32 %v127_v26, %v309_v2  ;;  %v136_v32 = vmul.f32 %v127_v26, %v313_v4 }
  0xc6   :  { %v219_v33 = vpop.eup %218  ;;  %155 = vst [vmem:[#allocation5 + $0x20] sm:$0xff] %v139_v27  ;;  %156 = vst [vmem:[#allocation5 + $0x28] sm:$0xff] %v140_v28  ;;  %v130_v34 = vadd.f32 1.0, %v217_v30  ;;  %226 = vrcp.f32 %v109_v29 }
  0xc7   :  { %151 = vst [vmem:[#allocation5] sm:$0xff] %v135_v31  ;;  %152 = vst [vmem:[#allocation5 + $0x8] sm:$0xff] %v136_v32  ;;  %v128_v35 = vadd.f32 1.0, %v219_v33 }
  0xc8   :  { %v141_v36 = vmul.f32 %v130_v34, %v315_v5  ;;  %v142_v0 = vmul.f32 %v130_v34, %v317_v6 }
  0xc9   :  { %v221_v37 = vpop.eup %220  ;;  %v137_v1 = vmul.f32 %v128_v35, %v321_v8  ;;  %v138_v38 = vmul.f32 %v128_v35, %v323_v9 }
  0xca   :  { %v223_v2 = vpop.eup %222  ;;  %157 = vst [vmem:[#allocation5 + $0x30] sm:$0xff] %v141_v36  ;;  %158 = vst [vmem:[#allocation5 + $0x38] sm:$0xff] %v142_v0  ;;  %v132_v4 = vadd.f32 1.0, %v221_v37 }
  0xcb   :  { %153 = vst [vmem:[#allocation5 + $0x10] sm:$0xff] %v137_v1  ;;  %154 = vst [vmem:[#allocation5 + $0x18] sm:$0xff] %v138_v38  ;;  %v131_v39 = vadd.f32 1.0, %v223_v2 }
  0xcc   :  { %v145_v40 = vmul.f32 %v132_v4, %v329_v12  ;;  %v146_v41 = vmul.f32 %v132_v4, %v331_v13 }
  0xcd   :  { %v225_v42 = vpop.eup %224  ;;  %v143_v5 = vmul.f32 %v131_v39, %v333_v14  ;;  %v144_v6 = vmul.f32 %v131_v39, %v335_v15 }
  0xce   :  { %161 = vst [vmem:[#allocation5 + $0x50] sm:$0xff] %v145_v40  ;;  %162 = vst [vmem:[#allocation5 + $0x58] sm:$0xff] %v146_v41  ;;  %v134_v8 = vadd.f32 1.0, %v225_v42 }
  0xcf   :  { %159 = vst [vmem:[#allocation5 + $0x40] sm:$0xff] %v143_v5  ;;  %160 = vst [vmem:[#allocation5 + $0x48] sm:$0xff] %v144_v6 }
  0xd0   :  { %v227_v9 = vpop.eup %226  ;;  %v149_v43 = vmul.f32 %v134_v8, %v341_v18  ;;  %v150_v44 = vmul.f32 %v134_v8, %v343_v19 }
  0xd1   :  { %v133_v12 = vadd.f32 1.0, %v227_v9 }
  0xd2   :  { %165 = vst [vmem:[#allocation5 + $0x70] sm:$0xff] %v149_v43  ;;  %166 = vst [vmem:[#allocation5 + $0x78] sm:$0xff] %v150_v44 }
  0xd3   :  { %v147_v13 = vmul.f32 %v133_v12, %v345_v20  ;;  %v148_v14 = vmul.f32 %v133_v12, %v347_v21 }
  0xd5   :  { %163 = vst [vmem:[#allocation5 + $0x60] sm:$0xff] %v147_v13  ;;  %164 = vst [vmem:[#allocation5 + $0x68] sm:$0xff] %v148_v14 }
  0xd6   :  { %261 = shalt.err (!%p258_p12)
}
  0xd7   :  { %s262_s24 = scalar_lea.hbm %s385_s1, 2048 }
  0xd8   :  { %p263_p13 = scmp.ne.s32.totalorder %s385_s1, %s262_s24  ;;  %p266_p0 = scmp.lt.u32.totalorder %s262_s24, %s385_s1 }
  0xda   :  { %p268_p1 = pnand %p266_p0, %p263_p13 }
  0xdc   :  { %271 = shalt.err (!%p268_p1)
}
  0xdd   :  { %178 = dma.vmem_to_hbm [thread:$0]  %s173_s20, 2048, %s385_s1, [#allocation4], %s277_s16, %s277_s16, %s278_s17  }
  0xde   :  { %274 = dma.done.wait [#allocation4], 2048  }
  0xdf   :  { %275 = vsyncadd [#allocation4], 4294965248 }
  0xe0   :  { %182 = vsyncpa [#allocation3], 1 }
  0xe1   :  { %183 = vsyncpa [#allocation4], 1 }

</bundles_post_ra>
